<compile_context>
chip_gen: v7x
topology: tpu7x:2x2x1
jax: 0.10.0
libtpu: 0.0.40
codegen_flags: <defaults>
</compile_context>

<pallas_src>
from functools import partial

import jax
import jax.numpy as jnp
from jax.experimental import pallas as pl
from jax.experimental.pallas import tpu as pltpu


def _invdepth_kernel(w_ref, b_ref, x_ref, top_ref, bot_ref, o_ref, xs_ref, *,
                     C, TH, SUB, Wp, min_disp, max_disp):
    """One (batch, row-strip) grid step.

    w_ref   : SMEM (C*9,)  f32      flattened conv weight, index = c*9 + ky*3 + kx
    b_ref   : SMEM (1,)    f32      conv bias
    x_ref   : VMEM (1, C, TH, Wp)   auto-pipelined input strip (double-buffered)
    top_ref : VMEM (1, 1, C, Wp)    row just above the strip (zeros at image top)
    bot_ref : VMEM (1, 1, C, Wp)    row just below the strip (zeros at image bottom)
    o_ref   : VMEM (1, 1, TH, Wp)   output strip
    xs_ref  : VMEM (C, TH+2, Wp)    1-row-halo'd strip assembled in VMEM
    """
    # Assemble the halo'd strip.  These are VMEM<->VMEM copies riding the ld/st
    # slots; the HBM traffic itself is overlapped with compute by the Pallas
    # pipeline (the kernel is VALU-bound on the tap loop).
    xs_ref[:, 0, :] = top_ref[0, 0]
    xs_ref[:, 1:TH + 1, :] = x_ref[0]
    xs_ref[:, TH + 1, :] = bot_ref[0, 0]

    f32 = jnp.float32
    zcol = jnp.zeros((SUB + 2, 1), f32)   # hoisted: zero column for the lane halo

    def conv_subblock(r0):
        # Three independent accumulators (one per kx tap) -> 3-way ILP on the
        # VALU instead of a single 9*C-deep dependent add chain.
        def accum_channel(c, accs):
            acc_l, acc_c, acc_r = accs
            # image rows (r0-1 .. r0+SUB)  ==  xs rows (r0 .. r0+SUB+1)
            xc = xs_ref[c, pl.ds(r0, SUB + 2), :].astype(f32)
            # Column halo with exact zero padding (no wrap to mask afterwards).
            x_m1 = jnp.concatenate([zcol, xc[:, :Wp - 1]], axis=1)  # x[:, j-1]
            x_p1 = jnp.concatenate([xc[:, 1:], zcol], axis=1)       # x[:, j+1]
            for ky in range(3):
                acc_l = acc_l + x_m1[ky:ky + SUB, :] * w_ref[c * 9 + ky * 3 + 0]
                acc_c = acc_c + xc[ky:ky + SUB, :] * w_ref[c * 9 + ky * 3 + 1]
                acc_r = acc_r + x_p1[ky:ky + SUB, :] * w_ref[c * 9 + ky * 3 + 2]
            return acc_l, acc_c, acc_r

        zero = jnp.zeros((SUB, Wp), f32)
        accs = (zero, zero, zero)
        if C <= 16:
            for c in range(C):                 # tiny channel count: full unroll
                accs = accum_channel(c, accs)
        else:
            # Single-output-channel conv: the VPU tap loop is the right engine
            # (an im2col/MXU path would use <1% of the MXU N dimension).
            accs = jax.lax.fori_loop(0, C, accum_channel, accs, unroll=2)
        acc_l, acc_c, acc_r = accs

        acc = acc_l + acc_c + acc_r + b_ref[0]
        disp = 1.0 / (1.0 + jnp.exp(-acc))     # exact sigmoid (epilogue-only cost)
        o_ref[0, 0, r0:r0 + SUB, :] = (
            min_disp + (max_disp - min_disp) * disp).astype(o_ref.dtype)

    # Static sub-block loop bounds the live register set (3 accumulators plus the
    # three (SUB+2, Wp) taps) well under the 64-vreg budget at production widths.
    for s in range(TH // SUB):
        conv_subblock(s * SUB)


def _pick_strip_rows(N, C, H, Wp, itemsize, budget_bytes=12 << 20):
    """Row-strip height: divides H, multiple of 8, fits a conservative VMEM
    budget, prefers 32-64 rows, and keeps >= 2 grid steps for v7x megacore."""
    cands = [th for th in range(8, H + 1, 8) if H % th == 0]
    if not cands:
        return H

    def resident_bytes(th):
        # 2x double-buffered: input strip + halo rows + output strip; 1x scratch.
        return itemsize * (2 * (C * th * Wp + 2 * C * Wp + th * Wp)
                           + C * (th + 2) * Wp)

    fitting = [th for th in cands if resident_bytes(th) <= budget_bytes]
    if not fitting:
        return min(cands)
    preferred = [th for th in fitting if th <= 64 and N * (H // th) >= 2]
    pool = preferred if preferred else fitting
    return max(pool)


def _pick_sub_rows(TH, Wp, cap_elems=4096):
    """Largest multiple-of-8 divisor of TH with SUB*Wp <= ~4 vregs."""
    best = None
    for d in range(8, TH + 1, 8):
        if TH % d == 0 and d * Wp <= cap_elems:
            best = d
    if best is None:
        best = 8 if TH % 8 == 0 else TH
    return best


def _strip_halos(xp, TH):
    """Rows just above / below each TH-row strip, shaped (N, nh, C, Wp).
    Zero rows at the image borders reproduce the conv's padding=1 semantics."""
    N, C, H, Wp = xp.shape
    nh = H // TH
    zero = jnp.zeros((N, 1, C, Wp), xp.dtype)
    if nh == 1:
        return zero, zero
    above = jnp.transpose(xp[:, :, TH - 1:H - 1:TH, :], (0, 2, 1, 3))  # (N,nh-1,C,Wp)
    below = jnp.transpose(xp[:, :, TH:H:TH, :], (0, 2, 1, 3))          # (N,nh-1,C,Wp)
    top = jnp.concatenate([zero, above], axis=1)
    bot = jnp.concatenate([below, zero], axis=1)
    return top, bot


def invdepth_predictor_pallas(x, weight, bias, *, min_depth=0.1, max_depth=120.0,
                              prefix="", postfix="", strip_rows=None):
    """x: (N, C, H, W), weight: (1, C, 3, 3), bias: (1,)."""
    N, C, H, W = x.shape
    min_disp = 1.0 / max_depth
    max_disp = 1.0 / min_depth

    # Lane-dense stores: pad W to the next multiple of 128 and slice afterwards.
    Wp = ((W + 127) // 128) * 128
    xp = x if Wp == W else jnp.pad(x, ((0, 0), (0, 0), (0, 0), (0, Wp - W)))

    itemsize = jnp.dtype(xp.dtype).itemsize
    TH = (_pick_strip_rows(N, C, H, Wp, itemsize) if strip_rows is None
          else int(strip_rows))
    assert H % TH == 0, "strip_rows must divide H"
    assert TH % 8 == 0 or TH == H, "strip_rows must be a multiple of 8 (or == H)"
    nh = H // TH
    SUB = _pick_sub_rows(TH, Wp)

    top, bot = _strip_halos(xp, TH)
    w_flat = weight.reshape(-1).astype(jnp.float32)   # (C*9,)
    b = bias.reshape(-1).astype(jnp.float32)          # (1,)

    kernel = partial(_invdepth_kernel, C=C, TH=TH, SUB=SUB, Wp=Wp,
                     min_disp=float(min_disp), max_disp=float(max_disp))

    out = pl.pallas_call(
        kernel,
        out_shape=jax.ShapeDtypeStruct((N, 1, H, Wp), x.dtype),
        grid_spec=pltpu.PrefetchScalarGridSpec(
            num_scalar_prefetch=0,
            grid=(N, nh),
            in_specs=[
                pl.BlockSpec(memory_space=pltpu.MemorySpace.SMEM),  # conv weight
                pl.BlockSpec(memory_space=pltpu.MemorySpace.SMEM),  # conv bias
                pl.BlockSpec((1, C, TH, Wp), lambda n, h: (n, 0, h, 0)),  # strip
                pl.BlockSpec((1, 1, C, Wp), lambda n, h: (n, h, 0, 0)),   # top halo
                pl.BlockSpec((1, 1, C, Wp), lambda n, h: (n, h, 0, 0)),   # bottom halo
            ],
            out_specs=pl.BlockSpec((1, 1, TH, Wp), lambda n, h: (n, 0, h, 0)),
            scratch_shapes=[pltpu.VMEM((C, TH + 2, Wp), xp.dtype)],
        ),
        compiler_params=pltpu.CompilerParams(
            dimension_semantics=("parallel", "parallel"),
            vmem_limit_bytes=32 * 1024 * 1024),
    )(w_flat, b, xp, top, bot)

    if Wp != W:
        out = out[..., :W]
    return {prefix + "inv_depths" + postfix: out}


def _reference(x, weight, bias, *, min_depth=0.1, max_depth=120.0):
    """Pure-JAX reference (lax conv) for correctness checking."""
    conv = jax.lax.conv_general_dilated(
        x.astype(jnp.float32), weight.astype(jnp.float32),
        window_strides=(1, 1), padding=((1, 1), (1, 1)),
        dimension_numbers=("NCHW", "OIHW", "NCHW"))
    conv = conv + bias.reshape(1, 1, 1, 1).astype(jnp.float32)
    disp = jax.nn.sigmoid(conv)
    min_disp, max_disp = 1.0 / max_depth, 1.0 / min_depth
    return (min_disp + (max_disp - min_disp) * disp).astype(x.dtype)


if __name__ == "__main__":
    key = jax.random.PRNGKey(0)
    k_x, k_w, k_b = jax.random.split(key, 3)

    N, C, H, W = 2, 4, 16, 128
    x = jax.random.normal(k_x, (N, C, H, W), dtype=jnp.float32)
    weight = jax.random.normal(k_w, (1, C, 3, 3), dtype=jnp.float32) * 0.1
    bias = jax.random.normal(k_b, (1,), dtype=jnp.float32) * 0.1

    ref = _reference(x, weight, bias, min_depth=0.1, max_depth=120.0)
    TOL = 1e-4   # exact sigmoid / f32 accumulation -> tight tolerance

    # Two row strips per image: exercises the row-halo inputs and zero borders.
    out_tiled = invdepth_predictor_pallas(
        x, weight, bias, min_depth=0.1, max_depth=120.0,
        strip_rows=8)["inv_depths"]
    jax.block_until_ready(out_tiled)
    assert out_tiled.shape == (N, 1, H, W)
    err = float(jnp.max(jnp.abs(out_tiled - ref)))
    assert err < TOL, f"tiled kernel mismatch vs reference: {err}"

    # Auto strip size (single strip per image at this H).
    out_auto = invdepth_predictor_pallas(
        x, weight, bias, min_depth=0.1, max_depth=120.0)["inv_depths"]
    jax.block_until_ready(out_auto)
    err = float(jnp.max(jnp.abs(out_auto - ref)))
    assert err < TOL, f"auto-strip kernel mismatch vs reference: {err}"

    # Non-multiple-of-128 width: wrapper pads to a lane-dense 128 and slices back.
    W2 = 96
    x2 = jax.random.normal(k_x, (N, C, H, W2), dtype=jnp.float32)
    ref2 = _reference(x2, weight, bias, min_depth=0.1, max_depth=120.0)
    out2 = invdepth_predictor_pallas(
        x2, weight, bias, min_depth=0.1, max_depth=120.0)["inv_depths"]
    jax.block_until_ready(out2)
    err = float(jnp.max(jnp.abs(out2 - ref2)))
    assert err < TOL, f"padded-width kernel mismatch vs reference: {err}"

    print("KERNEL_OK")
</pallas_src>

<mosaic_0001>
module attributes {stable_mosaic.version = 11 : i64} {
  func.func @_invdepth_kernel(%arg0: i32, %arg1: i32, %arg2: memref<36xf32, #tpu.memory_space<smem>>, %arg3: memref<1xf32, #tpu.memory_space<smem>>, %arg4: memref<1x4x8x128xf32, #tpu.memory_space<vmem>>, %arg5: memref<1x1x4x128xf32, #tpu.memory_space<vmem>>, %arg6: memref<1x1x4x128xf32, #tpu.memory_space<vmem>>, %arg7: memref<1x1x8x128xf32, #tpu.memory_space<vmem>>, %arg8: memref<4x10x128xf32, #tpu.memory_space<vmem>>) attributes {dimension_semantics = [#tpu.dimension_semantics<parallel>, #tpu.dimension_semantics<parallel>], iteration_bounds = array<i64: 2, 2>, scalar_prefetch = 0 : i64, scratch_operands = 1 : i64, tpu.core_type = #tpu.core_type<tc>, window_params = [{transform_indices = @transform_0, window_bounds = array<i64: 36>}, {transform_indices = @transform_1, window_bounds = array<i64: 1>}, {transform_indices = @transform_2, window_bounds = array<i64: 1, 4, 8, 128>}, {transform_indices = @transform_3, window_bounds = array<i64: 1, 1, 4, 128>}, {transform_indices = @transform_4, window_bounds = array<i64: 1, 1, 4, 128>}, {transform_indices = @transform_5, window_bounds = array<i64: 1, 1, 8, 128>}]} {
    %c0 = arith.constant 0 : index
    %c0_0 = arith.constant 0 : index
    %c0_1 = arith.constant 0 : index
    %c0_2 = arith.constant 0 : index
    %0 = vector.load %arg5[%c0, %c0_0, %c0_1, %c0_2] : memref<1x1x4x128xf32, #tpu.memory_space<vmem>>, vector<1x1x4x128xf32>
    %1 = vector.shape_cast %0 : vector<1x1x4x128xf32> to vector<4x128xf32>
    %c0_3 = arith.constant 0 : index
    %c0_4 = arith.constant 0 : index
    %c0_5 = arith.constant 0 : index
    %2 = vector.load %arg8[%c0_3, %c0_4, %c0_5] : memref<4x10x128xf32, #tpu.memory_space<vmem>>, vector<4x1x128xf32>
    %3 = vector.shape_cast %2 : vector<4x1x128xf32> to vector<4x128xf32>
    %4 = vector.shape_cast %1 : vector<4x128xf32> to vector<4x1x128xf32>
    tpu.vector_store %arg8[%c0_3, %c0_4, %c0_5], %4 {strides = array<i32>} : memref<4x10x128xf32, #tpu.memory_space<vmem>>, vector<4x1x128xf32>,
    %c0_6 = arith.constant 0 : index
    %c0_7 = arith.constant 0 : index
    %c0_8 = arith.constant 0 : index
    %c0_9 = arith.constant 0 : index
    %5 = vector.load %arg4[%c0_6, %c0_7, %c0_8, %c0_9] : memref<1x4x8x128xf32, #tpu.memory_space<vmem>>, vector<1x4x8x128xf32>
    %6 = vector.shape_cast %5 : vector<1x4x8x128xf32> to vector<4x8x128xf32>
    %c0_10 = arith.constant 0 : index
    %c1 = arith.constant 1 : index
    %c0_11 = arith.constant 0 : index
    %7 = vector.load %arg8[%c0_10, %c1, %c0_11] : memref<4x10x128xf32, #tpu.memory_space<vmem>>, vector<4x8x128xf32>
    tpu.vector_store %arg8[%c0_10, %c1, %c0_11], %6 {strides = array<i32>} : memref<4x10x128xf32, #tpu.memory_space<vmem>>, vector<4x8x128xf32>,
    %c0_12 = arith.constant 0 : index
    %c0_13 = arith.constant 0 : index
    %c0_14 = arith.constant 0 : index
    %c0_15 = arith.constant 0 : index
    %8 = vector.load %arg6[%c0_12, %c0_13, %c0_14, %c0_15] : memref<1x1x4x128xf32, #tpu.memory_space<vmem>>, vector<1x1x4x128xf32>
    %9 = vector.shape_cast %8 : vector<1x1x4x128xf32> to vector<4x128xf32>
    %c0_16 = arith.constant 0 : index
    %c9 = arith.constant 9 : index
    %c0_17 = arith.constant 0 : index
    %10 = vector.load %arg8[%c0_16, %c9, %c0_17] : memref<4x10x128xf32, #tpu.memory_space<vmem>>, vector<4x1x128xf32>
    %11 = vector.shape_cast %10 : vector<4x1x128xf32> to vector<4x128xf32>
    %12 = vector.shape_cast %9 : vector<4x128xf32> to vector<4x1x128xf32>
    tpu.vector_store %arg8[%c0_16, %c9, %c0_17], %12 {strides = array<i32>} : memref<4x10x128xf32, #tpu.memory_space<vmem>>, vector<4x1x128xf32>,
    %cst = arith.constant 0.000000e+00 : f32
    %13 = vector.broadcast %cst : f32 to vector<10x1xf32>
    %cst_18 = arith.constant 0.000000e+00 : f32
    %14 = vector.broadcast %cst_18 : f32 to vector<8x128xf32>
    %c0_19 = arith.constant 0 : index
    %c0_20 = arith.constant 0 : index
    %c0_21 = arith.constant 0 : index
    %15 = vector.load %arg8[%c0_19, %c0_20, %c0_21] : memref<4x10x128xf32, #tpu.memory_space<vmem>>, vector<1x10x128xf32>
    %16 = vector.shape_cast %15 : vector<1x10x128xf32> to vector<10x128xf32>
    %17 = vector.extract_strided_slice %16 {offsets = [0, 0], sizes = [10, 127], strides = [1, 1]} : vector<10x128xf32> to vector<10x127xf32>
    %18 = tpu.concatenate %13, %17 in 1 : vector<10x1xf32>, vector<10x127xf32> -> vector<10x128xf32>
    %19 = vector.extract_strided_slice %16 {offsets = [0, 1], sizes = [10, 127], strides = [1, 1]} : vector<10x128xf32> to vector<10x127xf32>
    %20 = tpu.concatenate %19, %13 in 1 : vector<10x127xf32>, vector<10x1xf32> -> vector<10x128xf32>
    %21 = vector.extract_strided_slice %18 {offsets = [0, 0], sizes = [8, 128], strides = [1, 1]} : vector<10x128xf32> to vector<8x128xf32>
    %c0_22 = arith.constant 0 : index
    %22 = memref.load %arg2[%c0_22] : memref<36xf32, #tpu.memory_space<smem>>
    %23 = vector.broadcast %22 : f32 to vector<8x128xf32>
    %24 = arith.mulf %21, %23 : vector<8x128xf32>
    %25 = arith.addf %14, %24 : vector<8x128xf32>
    %26 = vector.extract_strided_slice %16 {offsets = [0, 0], sizes = [8, 128], strides = [1, 1]} : vector<10x128xf32> to vector<8x128xf32>
    %c1_23 = arith.constant 1 : index
    %27 = memref.load %arg2[%c1_23] : memref<36xf32, #tpu.memory_space<smem>>
    %28 = vector.broadcast %27 : f32 to vector<8x128xf32>
    %29 = arith.mulf %26, %28 : vector<8x128xf32>
    %30 = arith.addf %14, %29 : vector<8x128xf32>
    %31 = vector.extract_strided_slice %20 {offsets = [0, 0], sizes = [8, 128], strides = [1, 1]} : vector<10x128xf32> to vector<8x128xf32>
    %c2 = arith.constant 2 : index
    %32 = memref.load %arg2[%c2] : memref<36xf32, #tpu.memory_space<smem>>
    %33 = vector.broadcast %32 : f32 to vector<8x128xf32>
    %34 = arith.mulf %31, %33 : vector<8x128xf32>
    %35 = arith.addf %14, %34 : vector<8x128xf32>
    %36 = vector.extract_strided_slice %18 {offsets = [1, 0], sizes = [8, 128], strides = [1, 1]} : vector<10x128xf32> to vector<8x128xf32>
    %c3 = arith.constant 3 : index
    %37 = memref.load %arg2[%c3] : memref<36xf32, #tpu.memory_space<smem>>
    %38 = vector.broadcast %37 : f32 to vector<8x128xf32>
    %39 = arith.mulf %36, %38 : vector<8x128xf32>
    %40 = arith.addf %25, %39 : vector<8x128xf32>
    %41 = vector.extract_strided_slice %16 {offsets = [1, 0], sizes = [8, 128], strides = [1, 1]} : vector<10x128xf32> to vector<8x128xf32>
    %c4 = arith.constant 4 : index
    %42 = memref.load %arg2[%c4] : memref<36xf32, #tpu.memory_space<smem>>
    %43 = vector.broadcast %42 : f32 to vector<8x128xf32>
    %44 = arith.mulf %41, %43 : vector<8x128xf32>
    %45 = arith.addf %30, %44 : vector<8x128xf32>
    %46 = vector.extract_strided_slice %20 {offsets = [1, 0], sizes = [8, 128], strides = [1, 1]} : vector<10x128xf32> to vector<8x128xf32>
    %c5 = arith.constant 5 : index
    %47 = memref.load %arg2[%c5] : memref<36xf32, #tpu.memory_space<smem>>
    %48 = vector.broadcast %47 : f32 to vector<8x128xf32>
    %49 = arith.mulf %46, %48 : vector<8x128xf32>
    %50 = arith.addf %35, %49 : vector<8x128xf32>
    %51 = vector.extract_strided_slice %18 {offsets = [2, 0], sizes = [8, 128], strides = [1, 1]} : vector<10x128xf32> to vector<8x128xf32>
    %c6 = arith.constant 6 : index
    %52 = memref.load %arg2[%c6] : memref<36xf32, #tpu.memory_space<smem>>
    %53 = vector.broadcast %52 : f32 to vector<8x128xf32>
    %54 = arith.mulf %51, %53 : vector<8x128xf32>
    %55 = arith.addf %40, %54 : vector<8x128xf32>
    %56 = vector.extract_strided_slice %16 {offsets = [2, 0], sizes = [8, 128], strides = [1, 1]} : vector<10x128xf32> to vector<8x128xf32>
    %c7 = arith.constant 7 : index
    %57 = memref.load %arg2[%c7] : memref<36xf32, #tpu.memory_space<smem>>
    %58 = vector.broadcast %57 : f32 to vector<8x128xf32>
    %59 = arith.mulf %56, %58 : vector<8x128xf32>
    %60 = arith.addf %45, %59 : vector<8x128xf32>
    %61 = vector.extract_strided_slice %20 {offsets = [2, 0], sizes = [8, 128], strides = [1, 1]} : vector<10x128xf32> to vector<8x128xf32>
    %c8 = arith.constant 8 : index
    %62 = memref.load %arg2[%c8] : memref<36xf32, #tpu.memory_space<smem>>
    %63 = vector.broadcast %62 : f32 to vector<8x128xf32>
    %64 = arith.mulf %61, %63 : vector<8x128xf32>
    %65 = arith.addf %50, %64 : vector<8x128xf32>
    %c1_24 = arith.constant 1 : index
    %c0_25 = arith.constant 0 : index
    %c0_26 = arith.constant 0 : index
    %66 = vector.load %arg8[%c1_24, %c0_25, %c0_26] : memref<4x10x128xf32, #tpu.memory_space<vmem>>, vector<1x10x128xf32>
    %67 = vector.shape_cast %66 : vector<1x10x128xf32> to vector<10x128xf32>
    %68 = vector.extract_strided_slice %67 {offsets = [0, 0], sizes = [10, 127], strides = [1, 1]} : vector<10x128xf32> to vector<10x127xf32>
    %69 = tpu.concatenate %13, %68 in 1 : vector<10x1xf32>, vector<10x127xf32> -> vector<10x128xf32>
    %70 = vector.extract_strided_slice %67 {offsets = [0, 1], sizes = [10, 127], strides = [1, 1]} : vector<10x128xf32> to vector<10x127xf32>
    %71 = tpu.concatenate %70, %13 in 1 : vector<10x127xf32>, vector<10x1xf32> -> vector<10x128xf32>
    %72 = vector.extract_strided_slice %69 {offsets = [0, 0], sizes = [8, 128], strides = [1, 1]} : vector<10x128xf32> to vector<8x128xf32>
    %c9_27 = arith.constant 9 : index
    %73 = memref.load %arg2[%c9_27] : memref<36xf32, #tpu.memory_space<smem>>
    %74 = vector.broadcast %73 : f32 to vector<8x128xf32>
    %75 = arith.mulf %72, %74 : vector<8x128xf32>
    %76 = arith.addf %55, %75 : vector<8x128xf32>
    %77 = vector.extract_strided_slice %67 {offsets = [0, 0], sizes = [8, 128], strides = [1, 1]} : vector<10x128xf32> to vector<8x128xf32>
    %c10 = arith.constant 10 : index
    %78 = memref.load %arg2[%c10] : memref<36xf32, #tpu.memory_space<smem>>
    %79 = vector.broadcast %78 : f32 to vector<8x128xf32>
    %80 = arith.mulf %77, %79 : vector<8x128xf32>
    %81 = arith.addf %60, %80 : vector<8x128xf32>
    %82 = vector.extract_strided_slice %71 {offsets = [0, 0], sizes = [8, 128], strides = [1, 1]} : vector<10x128xf32> to vector<8x128xf32>
    %c11 = arith.constant 11 : index
    %83 = memref.load %arg2[%c11] : memref<36xf32, #tpu.memory_space<smem>>
    %84 = vector.broadcast %83 : f32 to vector<8x128xf32>
    %85 = arith.mulf %82, %84 : vector<8x128xf32>
    %86 = arith.addf %65, %85 : vector<8x128xf32>
    %87 = vector.extract_strided_slice %69 {offsets = [1, 0], sizes = [8, 128], strides = [1, 1]} : vector<10x128xf32> to vector<8x128xf32>
    %c12 = arith.constant 12 : index
    %88 = memref.load %arg2[%c12] : memref<36xf32, #tpu.memory_space<smem>>
    %89 = vector.broadcast %88 : f32 to vector<8x128xf32>
    %90 = arith.mulf %87, %89 : vector<8x128xf32>
    %91 = arith.addf %76, %90 : vector<8x128xf32>
    %92 = vector.extract_strided_slice %67 {offsets = [1, 0], sizes = [8, 128], strides = [1, 1]} : vector<10x128xf32> to vector<8x128xf32>
    %c13 = arith.constant 13 : index
    %93 = memref.load %arg2[%c13] : memref<36xf32, #tpu.memory_space<smem>>
    %94 = vector.broadcast %93 : f32 to vector<8x128xf32>
    %95 = arith.mulf %92, %94 : vector<8x128xf32>
    %96 = arith.addf %81, %95 : vector<8x128xf32>
    %97 = vector.extract_strided_slice %71 {offsets = [1, 0], sizes = [8, 128], strides = [1, 1]} : vector<10x128xf32> to vector<8x128xf32>
    %c14 = arith.constant 14 : index
    %98 = memref.load %arg2[%c14] : memref<36xf32, #tpu.memory_space<smem>>
    %99 = vector.broadcast %98 : f32 to vector<8x128xf32>
    %100 = arith.mulf %97, %99 : vector<8x128xf32>
    %101 = arith.addf %86, %100 : vector<8x128xf32>
    %102 = vector.extract_strided_slice %69 {offsets = [2, 0], sizes = [8, 128], strides = [1, 1]} : vector<10x128xf32> to vector<8x128xf32>
    %c15 = arith.constant 15 : index
    %103 = memref.load %arg2[%c15] : memref<36xf32, #tpu.memory_space<smem>>
    %104 = vector.broadcast %103 : f32 to vector<8x128xf32>
    %105 = arith.mulf %102, %104 : vector<8x128xf32>
    %106 = arith.addf %91, %105 : vector<8x128xf32>
    %107 = vector.extract_strided_slice %67 {offsets = [2, 0], sizes = [8, 128], strides = [1, 1]} : vector<10x128xf32> to vector<8x128xf32>
    %c16 = arith.constant 16 : index
    %108 = memref.load %arg2[%c16] : memref<36xf32, #tpu.memory_space<smem>>
    %109 = vector.broadcast %108 : f32 to vector<8x128xf32>
    %110 = arith.mulf %107, %109 : vector<8x128xf32>
    %111 = arith.addf %96, %110 : vector<8x128xf32>
    %112 = vector.extract_strided_slice %71 {offsets = [2, 0], sizes = [8, 128], strides = [1, 1]} : vector<10x128xf32> to vector<8x128xf32>
    %c17 = arith.constant 17 : index
    %113 = memref.load %arg2[%c17] : memref<36xf32, #tpu.memory_space<smem>>
    %114 = vector.broadcast %113 : f32 to vector<8x128xf32>
    %115 = arith.mulf %112, %114 : vector<8x128xf32>
    %116 = arith.addf %101, %115 : vector<8x128xf32>
    %c2_28 = arith.constant 2 : index
    %c0_29 = arith.constant 0 : index
    %c0_30 = arith.constant 0 : index
    %117 = vector.load %arg8[%c2_28, %c0_29, %c0_30] : memref<4x10x128xf32, #tpu.memory_space<vmem>>, vector<1x10x128xf32>
    %118 = vector.shape_cast %117 : vector<1x10x128xf32> to vector<10x128xf32>
    %119 = vector.extract_strided_slice %118 {offsets = [0, 0], sizes = [10, 127], strides = [1, 1]} : vector<10x128xf32> to vector<10x127xf32>
    %120 = tpu.concatenate %13, %119 in 1 : vector<10x1xf32>, vector<10x127xf32> -> vector<10x128xf32>
    %121 = vector.extract_strided_slice %118 {offsets = [0, 1], sizes = [10, 127], strides = [1, 1]} : vector<10x128xf32> to vector<10x127xf32>
    %122 = tpu.concatenate %121, %13 in 1 : vector<10x127xf32>, vector<10x1xf32> -> vector<10x128xf32>
    %123 = vector.extract_strided_slice %120 {offsets = [0, 0], sizes = [8, 128], strides = [1, 1]} : vector<10x128xf32> to vector<8x128xf32>
    %c18 = arith.constant 18 : index
    %124 = memref.load %arg2[%c18] : memref<36xf32, #tpu.memory_space<smem>>
    %125 = vector.broadcast %124 : f32 to vector<8x128xf32>
    %126 = arith.mulf %123, %125 : vector<8x128xf32>
    %127 = arith.addf %106, %126 : vector<8x128xf32>
    %128 = vector.extract_strided_slice %118 {offsets = [0, 0], sizes = [8, 128], strides = [1, 1]} : vector<10x128xf32> to vector<8x128xf32>
    %c19 = arith.constant 19 : index
    %129 = memref.load %arg2[%c19] : memref<36xf32, #tpu.memory_space<smem>>
    %130 = vector.broadcast %129 : f32 to vector<8x128xf32>
    %131 = arith.mulf %128, %130 : vector<8x128xf32>
    %132 = arith.addf %111, %131 : vector<8x128xf32>
    %133 = vector.extract_strided_slice %122 {offsets = [0, 0], sizes = [8, 128], strides = [1, 1]} : vector<10x128xf32> to vector<8x128xf32>
    %c20 = arith.constant 20 : index
    %134 = memref.load %arg2[%c20] : memref<36xf32, #tpu.memory_space<smem>>
    %135 = vector.broadcast %134 : f32 to vector<8x128xf32>
    %136 = arith.mulf %133, %135 : vector<8x128xf32>
    %137 = arith.addf %116, %136 : vector<8x128xf32>
    %138 = vector.extract_strided_slice %120 {offsets = [1, 0], sizes = [8, 128], strides = [1, 1]} : vector<10x128xf32> to vector<8x128xf32>
    %c21 = arith.constant 21 : index
    %139 = memref.load %arg2[%c21] : memref<36xf32, #tpu.memory_space<smem>>
    %140 = vector.broadcast %139 : f32 to vector<8x128xf32>
    %141 = arith.mulf %138, %140 : vector<8x128xf32>
    %142 = arith.addf %127, %141 : vector<8x128xf32>
    %143 = vector.extract_strided_slice %118 {offsets = [1, 0], sizes = [8, 128], strides = [1, 1]} : vector<10x128xf32> to vector<8x128xf32>
    %c22 = arith.constant 22 : index
    %144 = memref.load %arg2[%c22] : memref<36xf32, #tpu.memory_space<smem>>
    %145 = vector.broadcast %144 : f32 to vector<8x128xf32>
    %146 = arith.mulf %143, %145 : vector<8x128xf32>
    %147 = arith.addf %132, %146 : vector<8x128xf32>
    %148 = vector.extract_strided_slice %122 {offsets = [1, 0], sizes = [8, 128], strides = [1, 1]} : vector<10x128xf32> to vector<8x128xf32>
    %c23 = arith.constant 23 : index
    %149 = memref.load %arg2[%c23] : memref<36xf32, #tpu.memory_space<smem>>
    %150 = vector.broadcast %149 : f32 to vector<8x128xf32>
    %151 = arith.mulf %148, %150 : vector<8x128xf32>
    %152 = arith.addf %137, %151 : vector<8x128xf32>
    %153 = vector.extract_strided_slice %120 {offsets = [2, 0], sizes = [8, 128], strides = [1, 1]} : vector<10x128xf32> to vector<8x128xf32>
    %c24 = arith.constant 24 : index
    %154 = memref.load %arg2[%c24] : memref<36xf32, #tpu.memory_space<smem>>
    %155 = vector.broadcast %154 : f32 to vector<8x128xf32>
    %156 = arith.mulf %153, %155 : vector<8x128xf32>
    %157 = arith.addf %142, %156 : vector<8x128xf32>
    %158 = vector.extract_strided_slice %118 {offsets = [2, 0], sizes = [8, 128], strides = [1, 1]} : vector<10x128xf32> to vector<8x128xf32>
    %c25 = arith.constant 25 : index
    %159 = memref.load %arg2[%c25] : memref<36xf32, #tpu.memory_space<smem>>
    %160 = vector.broadcast %159 : f32 to vector<8x128xf32>
    %161 = arith.mulf %158, %160 : vector<8x128xf32>
    %162 = arith.addf %147, %161 : vector<8x128xf32>
    %163 = vector.extract_strided_slice %122 {offsets = [2, 0], sizes = [8, 128], strides = [1, 1]} : vector<10x128xf32> to vector<8x128xf32>
    %c26 = arith.constant 26 : index
    %164 = memref.load %arg2[%c26] : memref<36xf32, #tpu.memory_space<smem>>
    %165 = vector.broadcast %164 : f32 to vector<8x128xf32>
    %166 = arith.mulf %163, %165 : vector<8x128xf32>
    %167 = arith.addf %152, %166 : vector<8x128xf32>
    %c3_31 = arith.constant 3 : index
    %c0_32 = arith.constant 0 : index
    %c0_33 = arith.constant 0 : index
    %168 = vector.load %arg8[%c3_31, %c0_32, %c0_33] : memref<4x10x128xf32, #tpu.memory_space<vmem>>, vector<1x10x128xf32>
    %169 = vector.shape_cast %168 : vector<1x10x128xf32> to vector<10x128xf32>
    %170 = vector.extract_strided_slice %169 {offsets = [0, 0], sizes = [10, 127], strides = [1, 1]} : vector<10x128xf32> to vector<10x127xf32>
    %171 = tpu.concatenate %13, %170 in 1 : vector<10x1xf32>, vector<10x127xf32> -> vector<10x128xf32>
    %172 = vector.extract_strided_slice %169 {offsets = [0, 1], sizes = [10, 127], strides = [1, 1]} : vector<10x128xf32> to vector<10x127xf32>
    %173 = tpu.concatenate %172, %13 in 1 : vector<10x127xf32>, vector<10x1xf32> -> vector<10x128xf32>
    %174 = vector.extract_strided_slice %171 {offsets = [0, 0], sizes = [8, 128], strides = [1, 1]} : vector<10x128xf32> to vector<8x128xf32>
    %c27 = arith.constant 27 : index
    %175 = memref.load %arg2[%c27] : memref<36xf32, #tpu.memory_space<smem>>
    %176 = vector.broadcast %175 : f32 to vector<8x128xf32>
    %177 = arith.mulf %174, %176 : vector<8x128xf32>
    %178 = arith.addf %157, %177 : vector<8x128xf32>
    %179 = vector.extract_strided_slice %169 {offsets = [0, 0], sizes = [8, 128], strides = [1, 1]} : vector<10x128xf32> to vector<8x128xf32>
    %c28 = arith.constant 28 : index
    %180 = memref.load %arg2[%c28] : memref<36xf32, #tpu.memory_space<smem>>
    %181 = vector.broadcast %180 : f32 to vector<8x128xf32>
    %182 = arith.mulf %179, %181 : vector<8x128xf32>
    %183 = arith.addf %162, %182 : vector<8x128xf32>
    %184 = vector.extract_strided_slice %173 {offsets = [0, 0], sizes = [8, 128], strides = [1, 1]} : vector<10x128xf32> to vector<8x128xf32>
    %c29 = arith.constant 29 : index
    %185 = memref.load %arg2[%c29] : memref<36xf32, #tpu.memory_space<smem>>
    %186 = vector.broadcast %185 : f32 to vector<8x128xf32>
    %187 = arith.mulf %184, %186 : vector<8x128xf32>
    %188 = arith.addf %167, %187 : vector<8x128xf32>
    %189 = vector.extract_strided_slice %171 {offsets = [1, 0], sizes = [8, 128], strides = [1, 1]} : vector<10x128xf32> to vector<8x128xf32>
    %c30 = arith.constant 30 : index
    %190 = memref.load %arg2[%c30] : memref<36xf32, #tpu.memory_space<smem>>
    %191 = vector.broadcast %190 : f32 to vector<8x128xf32>
    %192 = arith.mulf %189, %191 : vector<8x128xf32>
    %193 = arith.addf %178, %192 : vector<8x128xf32>
    %194 = vector.extract_strided_slice %169 {offsets = [1, 0], sizes = [8, 128], strides = [1, 1]} : vector<10x128xf32> to vector<8x128xf32>
    %c31 = arith.constant 31 : index
    %195 = memref.load %arg2[%c31] : memref<36xf32, #tpu.memory_space<smem>>
    %196 = vector.broadcast %195 : f32 to vector<8x128xf32>
    %197 = arith.mulf %194, %196 : vector<8x128xf32>
    %198 = arith.addf %183, %197 : vector<8x128xf32>
    %199 = vector.extract_strided_slice %173 {offsets = [1, 0], sizes = [8, 128], strides = [1, 1]} : vector<10x128xf32> to vector<8x128xf32>
    %c32 = arith.constant 32 : index
    %200 = memref.load %arg2[%c32] : memref<36xf32, #tpu.memory_space<smem>>
    %201 = vector.broadcast %200 : f32 to vector<8x128xf32>
    %202 = arith.mulf %199, %201 : vector<8x128xf32>
    %203 = arith.addf %188, %202 : vector<8x128xf32>
    %204 = vector.extract_strided_slice %171 {offsets = [2, 0], sizes = [8, 128], strides = [1, 1]} : vector<10x128xf32> to vector<8x128xf32>
    %c33 = arith.constant 33 : index
    %205 = memref.load %arg2[%c33] : memref<36xf32, #tpu.memory_space<smem>>
    %206 = vector.broadcast %205 : f32 to vector<8x128xf32>
    %207 = arith.mulf %204, %206 : vector<8x128xf32>
    %208 = arith.addf %193, %207 : vector<8x128xf32>
    %209 = vector.extract_strided_slice %169 {offsets = [2, 0], sizes = [8, 128], strides = [1, 1]} : vector<10x128xf32> to vector<8x128xf32>
    %c34 = arith.constant 34 : index
    %210 = memref.load %arg2[%c34] : memref<36xf32, #tpu.memory_space<smem>>
    %211 = vector.broadcast %210 : f32 to vector<8x128xf32>
    %212 = arith.mulf %209, %211 : vector<8x128xf32>
    %213 = arith.addf %198, %212 : vector<8x128xf32>
    %214 = vector.extract_strided_slice %173 {offsets = [2, 0], sizes = [8, 128], strides = [1, 1]} : vector<10x128xf32> to vector<8x128xf32>
    %c35 = arith.constant 35 : index
    %215 = memref.load %arg2[%c35] : memref<36xf32, #tpu.memory_space<smem>>
    %216 = vector.broadcast %215 : f32 to vector<8x128xf32>
    %217 = arith.mulf %214, %216 : vector<8x128xf32>
    %218 = arith.addf %203, %217 : vector<8x128xf32>
    %219 = arith.addf %208, %213 : vector<8x128xf32>
    %220 = arith.addf %219, %218 : vector<8x128xf32>
    %c0_34 = arith.constant 0 : index
    %221 = memref.load %arg3[%c0_34] : memref<1xf32, #tpu.memory_space<smem>>
    %222 = vector.broadcast %221 : f32 to vector<8x128xf32>
    %223 = arith.addf %220, %222 : vector<8x128xf32>
    %cst_35 = arith.constant 0.000000e+00 : f32
    %224 = vector.broadcast %cst_35 : f32 to vector<8x128xf32>
    %225 = arith.subf %224, %223 : vector<8x128xf32>
    %226 = math.exp %225 : vector<8x128xf32>
    %cst_36 = arith.constant 1.000000e+00 : f32
    %227 = vector.broadcast %cst_36 : f32 to vector<8x128xf32>
    %228 = arith.addf %227, %226 : vector<8x128xf32>
    %cst_37 = arith.constant 1.000000e+00 : f32
    %229 = vector.broadcast %cst_37 : f32 to vector<8x128xf32>
    %230 = arith.divf %229, %228 : vector<8x128xf32>
    %cst_38 = arith.constant 9.99166679 : f32
    %231 = vector.broadcast %cst_38 : f32 to vector<8x128xf32>
    %232 = arith.mulf %231, %230 : vector<8x128xf32>
    %cst_39 = arith.constant 0.00833333377 : f32
    %233 = vector.broadcast %cst_39 : f32 to vector<8x128xf32>
    %234 = arith.addf %233, %232 : vector<8x128xf32>
    %c0_40 = arith.constant 0 : index
    %c0_41 = arith.constant 0 : index
    %c0_42 = arith.constant 0 : index
    %c0_43 = arith.constant 0 : index
    %235 = vector.load %arg7[%c0_40, %c0_41, %c0_42, %c0_43] : memref<1x1x8x128xf32, #tpu.memory_space<vmem>>, vector<1x1x8x128xf32>
    %236 = vector.shape_cast %235 : vector<1x1x8x128xf32> to vector<8x128xf32>
    %237 = vector.shape_cast %234 : vector<8x128xf32> to vector<1x1x8x128xf32>
    tpu.vector_store %arg7[%c0_40, %c0_41, %c0_42, %c0_43], %237 {strides = array<i32>} : memref<1x1x8x128xf32, #tpu.memory_space<vmem>>, vector<1x1x8x128xf32>,
    return
  }
  func.func @transform_0(%arg0: i32, %arg1: i32) -> i32 {
    %c0_i32 = arith.constant 0 : i32
    %c0_i32_0 = arith.constant 0 : i32
    return %c0_i32 : i32
  }
  func.func @transform_1(%arg0: i32, %arg1: i32) -> i32 {
    %c0_i32 = arith.constant 0 : i32
    %c0_i32_0 = arith.constant 0 : i32
    return %c0_i32 : i32
  }
  func.func @transform_2(%arg0: i32, %arg1: i32) -> (i32, i32, i32, i32) {
    %c0_i32 = arith.constant 0 : i32
    %c0_i32_0 = arith.constant 0 : i32
    %c0_i32_1 = arith.constant 0 : i32
    return %arg0, %c0_i32, %arg1, %c0_i32_0 : i32, i32, i32, i32
  }
  func.func @transform_3(%arg0: i32, %arg1: i32) -> (i32, i32, i32, i32) {
    %c0_i32 = arith.constant 0 : i32
    %c0_i32_0 = arith.constant 0 : i32
    %c0_i32_1 = arith.constant 0 : i32
    return %arg0, %arg1, %c0_i32, %c0_i32_0 : i32, i32, i32, i32
  }
  func.func @transform_4(%arg0: i32, %arg1: i32) -> (i32, i32, i32, i32) {
    %c0_i32 = arith.constant 0 : i32
    %c0_i32_0 = arith.constant 0 : i32
    %c0_i32_1 = arith.constant 0 : i32
    return %arg0, %arg1, %c0_i32, %c0_i32_0 : i32, i32, i32, i32
  }
  func.func @transform_5(%arg0: i32, %arg1: i32) -> (i32, i32, i32, i32) {
    %c0_i32 = arith.constant 0 : i32
    %c0_i32_0 = arith.constant 0 : i32
    %c0_i32_1 = arith.constant 0 : i32
    return %arg0, %c0_i32, %arg1, %c0_i32_0 : i32, i32, i32, i32
  }
}

</mosaic_0001>

<bundles_post_ra>
// kernel: tpu_custom_call.1
= control target key start
LH: loop header
LB: loop body
LE: loop exit
PB: predicated region body
PF: predicated region fallthrough
CT: control target
= control target key end

     0   :  { %s1952_s0 = inlined_call_operand.vmem [shape: f32[36], index: 0, kind: input, shape index: {}]   ;;  %s1953_s1 = inlined_call_operand.<no memory space> [shape: f32[1], index: 1, kind: input, shape index: {}]   ;;  %s1954_s2 = inlined_call_operand.hbm [shape: f32[2,4,16,128], index: 2, kind: input, shape index: {}]   ;;  %s1955_s3 = inlined_call_operand.hbm [shape: f32[2,2,4,128], index: 3, kind: input, shape index: {}]   ;;  %s1956_s4 = inlined_call_operand.hbm [shape: f32[2,2,4,128], index: 4, kind: input, shape index: {}]   ;;  %s1957_s5 = inlined_call_operand.hbm [shape: f32[2,1,16,128], index: 5, kind: output, shape index: {}]  }
   0x1   :  { %1970 = sst [smem:[#allocation23_spill]] %s1952_s0 }
   0x2   :  { %1971 = sst [smem:[#allocation24_spill]] %s1955_s3 }
   0x3   :  { %10 = sst [smem:[#allocation3]] %s1953_s1 }
   0x4   :  { %11 = vsyncpa [#allocation7], 0 }
   0x5   :  { %12 = vsyncpa [#allocation5], 0 }
   0x6   :  { %14 = vsyncpa [#allocation5 + $0x1], 0 }
   0x7   :  { %15 = vsyncpa [#allocation10], 0 }
   0x8   :  { %17 = vsyncpa [#allocation10 + $0x1], 0 }
   0x9   :  { %18 = vsyncpa [#allocation6], 0 }
   0xa   :  { %20 = vsyncpa [#allocation6 + $0x1], 0  ;;  %s1435_s20 = smov 0   ;;  %s1437_s21 = smov 0  }
   0xb   :  { %s1439_s22 = smov 0   ;;  %s1441_s23 = smov 0  }
   0xc   :  { %s1443_s24 = smov 0   ;;  %s1445_s25 = smov 0  }
   0xd   :  { %s1447_s1 = smov 0   ;;  %s1449_s26 = smov 0  }
   0xe LB: > { %1972 = sst [smem:[#allocation17_spill]] %s1369_s22  ;;  %s35_s27 = sadd.s32 1, %s1381_s25  ;;  %s1389_s26 = sphi %s1449_s26, %s26_s26   ;;  %s1385_s1 = sphi %s1447_s1, %s2001_s1   ;;  %s1381_s25 = sphi %s1445_s25, %s2005_s25   ;;  %s1377_s24 = sphi %s1443_s24, %s1999_s24   ;;  %s1373_s23 = sphi %s1441_s23, %s2004_s23   ;;  %s1369_s22 = sphi %s1439_s22, %s1998_s22   ;;  %s1365_s21 = sphi %s1437_s21, %s2003_s21   ;;  %s1361_s20 = sphi %s1435_s20, %s2002_s20  }
   0xf   : > { %1973 = sst [smem:[#allocation18_spill]] %s1385_s1  ;;  %s38_s28 = sadd.s32 1, %s1385_s1 }
  0x10   : > { %p36_p0 = scmp.ge.s32.totalorder %s35_s27, 2  ;;  %s89_s29 = sadd.s32 1, %s1369_s22 }
  0x11   : > { %p1960_p1 = scmp.ne.s32.totalorder %s1369_s22, %s1365_s21  ;;  %p97_p2 = scmp.eq.s32.totalorder %s1389_s26, 0 }
  0x12   : > { %s2007_s27 = smov (%p36_p0, %s35_s27), 0  ;;  %s2009_s28 = smov (!%p36_p0, %s38_s28), %s1385_s1 }
  0x13   : > { %1974 = sst [smem:[#allocation19_spill]] %s2007_s27  ;;  %s85_s30 = ssub.s32 %s1381_s25, %s2007_s27 }
  0x14   : > { %p98_p3 = por %p97_p2, %p1960_p1  ;;  %p40_p4 = scmp.ge.s32.totalorder %s2009_s28, 2 }
  0x15   : > { %p1100_p5 = scmp.lt.s32.totalorder %s1389_s26, 4  ;;  %s1491_s6 = sand.u32 1, %s1369_s22  }
  0x16   : > { %s2011_s28 = smov (%p40_p4, %s2009_s28), 0  ;;  %s1008_s7 = sshll.u32 %s1491_s6, 5 }
  0x17   : > { %1975 = sst [smem:[#allocation20_spill]] %s2011_s28  ;;  %s84_s8 = ssub.s32 %s1385_s1, %s2011_s28 }
  0x18   : > { %s86_s9 = sor.u32 %s85_s30, %s84_s8  ;;  %s228_s10 = scalar_lea.vmem [#allocation8], %s1008_s7 }
  0x19   : > { %s236_s11 = sshll.u32 %s228_s10, 4  ;;  %p87_p6 = scmp.eq.s32.totalorder %s86_s9, 0  ;;  %s1498_s11 = int_to_ptr.vmem [resolvable:$true] %s236_s11 }
  0x1a   : > { %p1500_p7 = pnand %p1100_p5, %p98_p3  ;;  %s246_s13 = sand.u32 1, %s1389_s26  }
  0x1b   : > { %s1506_s14 = scalar_select %p87_p6, %s1369_s22, %s89_s29  }
  0x1c   : > { %s1958_s15 = sshll.u32 %s1491_s6, 2  ;;  %s1012_s16 = sshll.u32 %s1385_s1, 1 }
  0x1d   : > { %1977 = sst [smem:[#allocation21_spill]] %s1506_s14  ;;  %s1511_s17 = sadd.s32 %s1381_s25, %s1012_s16 }
  0x1e   : > { %s1959_s18 = sshll.u32 %s1511_s17, 6  ;;  %s250_s19 = scalar_lea.vmem [#allocation9], %s1958_s15 }
  0x1f   : > { %s259_s30 = sshll.u32 %s250_s19, 4  ;;  %s1978_s3 = sld [smem:[#allocation24_spill]]  ;;  %s1523_s30 = int_to_ptr.vmem [resolvable:$true] %s259_s30 }
  0x20   : > { %s1525_s29 = scalar_lea.sflag [#allocation10], %s246_s13  ;;  %p1531_p9 = pneg %p1500_p7 }
  0x25   : > { %s1521_s9 = scalar_lea.hbm %s1978_s3, %s1959_s18  ;;  %s1183_s8 = scalar_lea.hbm %s1978_s3, 256 }
  0x26   : > { %s1178_s10 = scalar_lea.hbm %s1521_s9, 64  ;;  %p1184_p12 = scmp.lt.u32.totalorder %s1521_s9, %s1978_s3 }
  0x27   : > { %p1179_p8 = scmp.ne.s32.totalorder %s1521_s9, %s1178_s10  ;;  %p1185_p13 = scmp.lt.u32.totalorder %s1183_s8, %s1178_s10 }
  0x28   : > { %p1187_p2 = scmp.lt.u32.totalorder %s1178_s10, %s1521_s9 }
  0x29   : > { %p1181_p10 = pnand %p1531_p9, %p1179_p8  ;;  %p1186_p0 = por %p1185_p13, %p1184_p12 }
  0x2b   : > { %p1182_p11 = pneg %p1181_p10  ;;  %p1188_p3 = por %p1187_p2, %p1186_p0 }
  0x2d   : > { %p1189_p4 = pnand %p1188_p3, %p1182_p11 }
  0x2f   : > { %1192 = shalt.err (!%p1189_p4)
}
  0x30   : > { %s1193_s13 = scalar_lea.vmem %s1523_s30, 64  ;;  %s1391_s19 = smov [#allocation9]  }
  0x31   : > { %p1194_p5 = scmp.ne.s32.totalorder %s1523_s30, %s1193_s13  ;;  %s1198_s7 = sshll.u32 %s1391_s19, 4  ;;  %s1199_s7 = int_to_ptr.vmem [resolvable:$false] %s1198_s7 }
  0x32   : > { %s1200_s15 = scalar_lea.vmem %s1199_s7, 128  ;;  %p1201_p10 = scmp.lt.s32.totalorder %s1523_s30, %s1199_s7 }
  0x33   : > { %p1196_p6 = pnand %p1194_p5, %p1531_p9  ;;  %p1202_p1 = scmp.lt.s32.totalorder %s1200_s15, %s1193_s13 }
  0x35   : > { %p1197_p8 = pneg %p1196_p6  ;;  %p1203_p12 = por %p1202_p1, %p1201_p10 }
  0x37   : > { %p1204_p13 = pnand %p1203_p12, %p1197_p8 }
  0x39   : > { %1207 = shalt.err (!%p1204_p13)
}
  0x3a   : > { %1091 = dma.hbm_to_vmem [thread:$0]  (!%p1500_p7), %s1521_s9, 64, %s1523_s30, %s1525_s29  }
  0x3b   : > { %s1980_s18 = sshll.u32 %s1511_s17, 6  ;;  %s1563_s19 = sadd.s32 4294967295, %s1389_s26  }
  0x3c   : > { %s1560_s13 = scalar_lea.hbm %s1956_s4, %s1980_s18  ;;  %s1004_s7 = sadd.s32 4294967294, %s1389_s26  }
  0x3d   : > { %p102_p1 = scmp.ne.s32.totalorder %s1365_s21, %s1361_s20  ;;  %p1966_p11 = scmp.eq.s32.totalorder %s1563_s19, 0 }
  0x3e   : > { %p184_p0 = scmp.eq.s32.totalorder %s1563_s19, 3  ;;  %p190_p2 = scmp.eq.s32.totalorder %s1004_s7, 3 }
  0x3f   : > { %p1572_p3 = por %p1966_p11, %p102_p1  ;;  %p1005_p4 = scmp.ge.s32.totalorder %s1389_s26, 1 }
  0x40   : > { %p1982_p5 = scmp.ne.s32.totalorder %s1369_s22, %s1365_s21  ;;  %p1584_p8 = por %p190_p2, %p102_p1 }
  0x41   : > { %s1981_s17 = scalar_select %p1572_p3, 1, 0 }
  0x42   : > { %p1580_p6 = por %p184_p0, %p1982_p5  ;;  %p197_p10 = scmp.lt.s32.totalorder %s1389_s26, 5 }
  0x43   : > { %s1984_s9 = scalar_select %p1584_p8, 1, 0 }
  0x44   : > { %s1983_s30 = scalar_select %p1580_p6, 1, 0 }
  0x45   : > { %1985 = sst [smem:[#allocation22_spill]] %s1984_s9  ;;  %s1986_s0 = sld [smem:[#allocation23_spill]] }
  0x46   : > { %p1592_p12 = pnand %p1005_p4, %p197_p10  ;;  %s1009_s7 = sshll.u32 %s1385_s1, 3 }
  0x47   : > { %s233_s3 = sadd.s32 %s1381_s25, %s1009_s7  ;;  %s1989_s18 = sshll.u32 %s1491_s6, 2 }
  0x48   : > { %s1987_s8 = scalar_select %p1592_p12, 1, 0 }
  0x49   : > { %p1081_p13 = pneg %p1592_p12  ;;  %s1010_s28 = sshll.u32 %s233_s3, 7 }
  0x4a   : > { %s1609_s15 = scalar_lea.hbm %s1954_s2, %s1010_s28 }
  0x4b   : > { %s210_s10 = sshll.u32 %s1986_s0, 4  ;;  %p1602_p1 = pnand %p1081_p13, %p1966_p11  ;;  %s211_s10 = int_to_ptr.vmem [resolvable:$true] %s210_s10 }
  0x4c   : > { %s270_s0 = scalar_lea.vmem [#allocation11], %s1989_s18  ;;  %s1208_s1 = scalar_lea.vmem %s211_s10, 16 }
  0x4d   : > { %s279_s9 = sshll.u32 %s270_s0, 4  ;;  %p1209_p0 = scmp.ne.s32.totalorder %s211_s10, %s1208_s1  ;;  %s1613_s9 = int_to_ptr.vmem [resolvable:$true] %s279_s9 }
  0x4e   : > { %p1210_p2 = pneg %p1602_p1  ;;  %p1216_p10 = scmp.lt.s32.totalorder %s211_s10, %s211_s10 }
  0x4f   : > { %p1217_p13 = scmp.lt.s32.totalorder %s1208_s1, %s1208_s1 }
  0x50   : > { %p1211_p4 = pnand %p1210_p2, %p1209_p0 }
  0x51   : > { %p1218_p11 = por %p1217_p13, %p1216_p10 }
  0x52   : > { %p1212_p5 = pneg %p1211_p4 }
  0x54   : > { %p1219_p8 = pnand %p1218_p11, %p1212_p5 }
  0x56   : > { %1222 = shalt.err (!%p1219_p8)
}
  0x57   : > { %s1392_s3 = smov [#allocation4]   ;;  %s225_s0 = scalar_lea.sflag [#allocation5], %s1491_s6 }
  0x58   : > { %1084 = dma.vmem_to_smem (!%p1602_p1), %s211_s10, 16, %s1392_s3, [#allocation7]  }
  0x59   : > { %s1223_s22 = scalar_lea.hbm %s1609_s15, 512  ;;  %s1228_s14 = scalar_lea.hbm %s1954_s2, 2048 }
  0x5a   : > { %p1224_p6 = scmp.ne.s32.totalorder %s1609_s15, %s1223_s22  ;;  %p1229_p11 = scmp.lt.u32.totalorder %s1609_s15, %s1954_s2 }
  0x5b   : > { %p1230_p8 = scmp.lt.u32.totalorder %s1228_s14, %s1223_s22  ;;  %p1232_p5 = scmp.lt.u32.totalorder %s1223_s22, %s1609_s15 }
  0x5c   : > { %p1226_p0 = pnand %p1224_p6, %p1531_p9 }
  0x5d   : > { %p1231_p4 = por %p1230_p8, %p1229_p11 }
  0x5e   : > { %p1227_p2 = pneg %p1226_p0 }
  0x5f   : > { %p1233_p10 = por %p1232_p5, %p1231_p4 }
  0x61   : > { %p1234_p13 = pnand %p1233_p10, %p1227_p2 }
  0x63   : > { %1237 = shalt.err (!%p1234_p13)
}
  0x64   : > { %s1238_s27 = scalar_lea.vmem %s1498_s11, 512  ;;  %s1393_s10 = smov [#allocation8]  }
  0x65   : > { %p1239_p6 = scmp.ne.s32.totalorder %s1498_s11, %s1238_s27  ;;  %s1243_s3 = sshll.u32 %s1393_s10, 4  ;;  %s1244_s3 = int_to_ptr.vmem [resolvable:$false] %s1243_s3 }
  0x66   : > { %s1245_s1 = scalar_lea.vmem %s1244_s3, 1024  ;;  %p1246_p3 = scmp.lt.s32.totalorder %s1498_s11, %s1244_s3 }
  0x67   : > { %p1241_p1 = pnand %p1239_p6, %p1531_p9  ;;  %p1247_p12 = scmp.lt.s32.totalorder %s1245_s1, %s1238_s27 }
  0x69   : > { %p1242_p0 = pneg %p1241_p1  ;;  %p1248_p11 = por %p1247_p12, %p1246_p3 }
  0x6b   : > { %p1249_p8 = pnand %p1248_p11, %p1242_p0 }
  0x6d   : > { %1252 = shalt.err (!%p1249_p8)
}
  0x6e   : > { %s1394_s22 = smov 256   ;;  %s1395_s28 = smov 128  }
  0x6f   : > { %s1396_s14 = smov 8   ;;  %s1253_s7 = scalar_lea.hbm %s1560_s13, 64 }
  0x70   : > { %1088 = dma.hbm_to_vmem [thread:$0]  (!%p1500_p7), %s1609_s15, 512, %s1498_s11, %s225_s0, %s1394_s22, %s1395_s28, %s1396_s14  }
  0x71   : > { %p1254_p2 = scmp.ne.s32.totalorder %s1560_s13, %s1253_s7  ;;  %s1258_s10 = scalar_lea.hbm %s1956_s4, 256 }
  0x72   : > { %p1259_p4 = scmp.lt.u32.totalorder %s1560_s13, %s1956_s4  ;;  %p1260_p5 = scmp.lt.u32.totalorder %s1258_s10, %s1253_s7 }
  0x73   : > { %p1256_p3 = pnand %p1254_p2, %p1531_p9  ;;  %p1262_p13 = scmp.lt.u32.totalorder %s1253_s7, %s1560_s13 }
  0x74   : > { %p1261_p10 = por %p1260_p5, %p1259_p4 }
  0x75   : > { %p1257_p12 = pneg %p1256_p3 }
  0x76   : > { %p1263_p6 = por %p1262_p13, %p1261_p10 }
  0x78   : > { %p1264_p1 = pnand %p1263_p6, %p1257_p12 }
  0x7a   : > { %1267 = shalt.err (!%p1264_p1)
}
  0x7b   : > { %s1268_s6 = scalar_lea.vmem %s1613_s9, 64  ;;  %s1397_s11 = smov [#allocation11]  }
  0x7c   : > { %p1269_p0 = scmp.ne.s32.totalorder %s1613_s9, %s1268_s6  ;;  %s1273_s15 = sshll.u32 %s1397_s11, 4  ;;  %s1274_s15 = int_to_ptr.vmem [resolvable:$false] %s1273_s15 }
  0x7d   : > { %s1275_s0 = scalar_lea.vmem %s1274_s15, 128  ;;  %p1276_p2 = scmp.lt.s32.totalorder %s1613_s9, %s1274_s15 }
  0x7e   : > { %p1271_p11 = pnand %p1269_p0, %p1531_p9  ;;  %p1277_p3 = scmp.lt.s32.totalorder %s1275_s0, %s1268_s6 }
  0x80   : > { %p1272_p8 = pneg %p1271_p11  ;;  %p1278_p4 = por %p1277_p3, %p1276_p2 }
  0x82   : > { %p1279_p5 = pnand %p1278_p4, %p1272_p8 }
  0x84   : > { %1282 = shalt.err (!%p1279_p5)
}
  0x85   : > { %1094 = dma.hbm_to_vmem [thread:$0]  (!%p1500_p7), %s1560_s13, 64, %s1613_s9, %s1525_s29  }
  0x86   : > { %p1990_p12 = scmp.ne.s32.totalorder %s1987_s8, 0 }
  0x87   : > { %p1991_p9 = scmp.eq.s32.totalorder (!%p1990_p12), %s1563_s19, 0 }
  0x88   : > { %288 = sbr.rel (%p1990_p12) target bundleno = 370 (0x172), region = 40 }
  0x8f   : > { %1344 = dma.done.wait (%p1991_p9), [#allocation7], 16   ;;  %p1992_p10 = pmov %p1991_p9 }
  0x90   : > { %s1672_s16 = sand.u32 1, %s1365_s21   ;;  %p1993_p7 = scmp.ne.s32.totalorder %s1981_s17, 0 }
  0x91   : > { %1346 = vsyncadd (%p1992_p10), [#allocation7], 4294967280  ;;  %s1019_s12 = sshll.u32 %s1672_s16, 5  ;;  %s295_s22 = scalar_lea.sflag [#allocation5], %s1672_s16 }
  0x92   : > { %s1676_s28 = scalar_lea.vmem [#allocation8], %s1019_s12 }
  0x93   : > { %1348 = dma.done.wait (%p1993_p7), %s295_s22, 512  }
  0x94   : > { %1350 = vsyncadd (%p1993_p7), %s295_s22, 4294966784  ;;  %s303_s29 = sand.u32 1, %s1563_s19   ;;  %s1020_s13 = sshll.u32 %s1672_s16, 2 }
  0x95   : > { %s304_s9 = scalar_lea.sflag [#allocation10], %s303_s29  ;;  %s307_s8 = scalar_lea.vmem [#allocation9], %s1020_s13 }
  0x96   : > { %1352 = dma.done.wait (%p1993_p7), %s304_s9, 128  }
  0x97   : > { %1354 = vsyncadd (%p1993_p7), %s304_s9, 4294967168  ;;  %s316_s14 = scalar_lea.vmem [#allocation11], %s1020_s13 }
  0x98   : > { %321 = sfence }
  0x99   : > { %v1688_v0 = vld.sshfl [vmem:[%s307_s8] sm:$0x33 pattern:$0x75316420]  ;;  %v367_v2 = vlaneseq  ;;  %s1692_s19 = sld [smem:[#allocation4 + $0x1]]  ;;  %v389_v3 = vld [vmem:[%s1676_s28 + $0x8] sm:$0xff] }
  0x9a   : > { %v388_v1 = vld [vmem:[%s1676_s28] sm:$0xff]  ;;  %1024 = vst.sshfl [vmem:[#allocation2] sm:$0x1 pattern:$0x73625140] %v1688_v0  ;;  %v1697_v4 = vcombine.high %v1688_v0, %v1688_v0  ;;  %s1699_s17 = sld [smem:[#allocation4 + $0x4]] }
  0x9b   : > { %392 = vst [vmem:[#allocation2 + $0x1] sm:$0xff] %v388_v1  ;;  %v1026_v5 = vld.sshfl [vmem:[%s316_s14] sm:$0x33 pattern:$0x75316420]  ;;  %393 = vst [vmem:[#allocation2 + $0x11] sm:$0xff] %v389_v3 }
  0x9c   : > { %1027 = vst.sshfl [vmem:[#allocation2 + $0x9] sm:$0x1 pattern:$0x73625140] %v1026_v5  ;;  %s1701_s7 = sld [smem:[#allocation4 + $0x7]]  ;;  %v405_v6 = vcombine.high %v1026_v5, %v1026_v5  ;;  %s1703_s18 = sld [smem:[#allocation4 + $0xd]] }
  0x9d   : > { %1025 = vst.sshfl [vmem:[#allocation2 + $0x10] sm:$0x1 pattern:$0x73625140] %v1697_v4  ;;  %s1706_s27 = sld [smem:[#allocation4 + $0x10]]  ;;  %s1708_s10 = sld [smem:[#allocation4 + $0xa]] }
  0x9e   : > { %v1398_v7 = vmov 1966171168   ;;  %v368_v9 = vshrl.u32 %v367_v2, 7  ;;  %v390_v10 = vld [vmem:[%s1676_s28 + $0x10] sm:$0xff]  ;;  %v391_v11 = vld [vmem:[%s1676_s28 + $0x18] sm:$0xff]  ;;  %s1399_s3 = smov 127  }
  0x9f   : > { %v365_v8 = vunpack.c.l.s4 %v1398_v7  ;;  %1028 = vst.sshfl [vmem:[#allocation2 + $0x19] sm:$0x1 pattern:$0x73625140] %v405_v6  ;;  %394 = vst [vmem:[#allocation2 + $0x21] sm:$0xff] %v390_v10  ;;  %v457_v13 = vstv %s1692_s19  ;;  %s1400_s1 = smov 1  }
  0xa0   : > { %395 = vst [vmem:[#allocation2 + $0x31] sm:$0xff] %v391_v11  ;;  %v477_v15 = vstv %s1699_s17  ;;  %s1720_s6 = sld [smem:[#allocation4 + $0x16]]  ;;  %s1722_s11 = sld [smem:[#allocation4 + $0x19]]  ;;  %vm470_vm0 = vcmask 1046528   ;;  %vm504_vm1 = vcmask 1045504   ;;  %vm449_vm2 = vcmask 1039360  }
  0xa1   : > { %v366_v12 = vunpack.c.0.s8 %v365_v8  ;;  %s1047_s15 = sld [smem:[#allocation4 + $0x13]]  ;;  %s1733_s0 = sld [smem:[#allocation4 + $0x1f]]  ;;  %vm440_vm3 = vcmask 7168  }
  0xa2   : > { %v430_v14 = vld [vmem:[#allocation2] sm:$0xff]  ;;  %v511_v17 = vstv %s1701_s7  ;;  %v577_v19 = vstv %s1703_s18  ;;  %s1735_s12 = sld [smem:[#allocation4 + $0x22]]  ;;  %s1742_s22 = sld [smem:[#allocation4 + $0x1c]] }
  0xa3   : > { %v369_v16 = vsub.s32 %v366_v12, %v368_v9  ;;  %443 = vrot.lane.b32.xlu1 %v430_v14, %s1399_s3  ;;  %434 = vrot.lane.b32.xlu0 %v430_v14, %s1400_s1  ;;  %v478_v18 = vmul.f32 %v477_v15, %v430_v14  ;;  %v458_v20 = vmul.f32 %v457_v13, %v430_v14  ;;  %v431_v21 = vld [vmem:[#allocation2 + $0x8] sm:$0x3]  ;;  %v610_v23 = vstv %s1706_s27  ;;  %s1761_s28 = sld [smem:[#allocation4 + $0x2]]  ;;  %s1763_s29 = sld [smem:[#allocation4]] }
  0xa4   : > { %v512_v22 = vmul.f32 %v511_v17, %v430_v14  ;;  %v479_v25 = vmul.f32 %v477_v15, %v431_v21  ;;  %v513_v26 = vmul.f32 %v511_v17, %v431_v21  ;;  %v533_v28 = vld [vmem:[#allocation2 + $0x10] sm:$0xff]  ;;  %v558_v29 = vstv %s1708_s10  ;;  %s1765_s13 = sld [smem:[#allocation4 + $0x5]]  ;;  %s1767_s9 = sld [smem:[#allocation4 + $0x8]] }
  0xa5   : > { %v412_v24 = vrot.slane %v1026_v5, %v369_v16  ;;  %v482_v27 = vrot.slane %v478_v18, 1  ;;  %v578_v32 = vmul.f32 %v577_v19, %v533_v28  ;;  %v611_v33 = vmul.f32 %v610_v23, %v533_v28  ;;  %s1769_s8 = sld [smem:[#allocation4 + $0x3]]  ;;  %s1771_s14 = sld [smem:[#allocation4 + $0x6]] }
  0xa6   : > { %v516_v30 = vrot.slane %v512_v22, 2  ;;  %v534_v31 = vld [vmem:[#allocation2 + $0x18] sm:$0x3]  ;;  %v483_v35 = vrot.slane %v479_v25, 1  ;;  %v517_v36 = vrot.slane %v513_v26, 2  ;;  %v559_v46 = vmul.f32 %v558_v29, %v533_v28  ;;  %s1773_s19 = sld [smem:[#allocation4 + $0xc]] }
  0xa7   : > { %v420_v34 = vcombine.high %v412_v24, %v412_v24  ;;  %445 = vrot.lane.b32.xlu1 %v431_v21, %s1399_s3  ;;  %436 = vrot.lane.b32.xlu0 %v431_v21, %s1400_s1  ;;  %v579_v37 = vmul.f32 %v577_v19, %v534_v31  ;;  %v612_v38 = vmul.f32 %v610_v23, %v534_v31  ;;  %v582_v39 = vrot.slane %v578_v32, 1  ;;  %s1775_s17 = sld [smem:[#allocation4 + $0xf]]  ;;  %s1777_s7 = sld [smem:[#allocation4 + $0x9]] }
  0xa8   : > { %v615_v40 = vrot.slane %v611_v33, 2  ;;  %v484_v41 = vsel %vm470_vm0, %v482_v27, %v483_v35  ;;  %v518_v42 = vsel %vm504_vm1, %v516_v30, %v517_v36  ;;  %v370_v47 = vrot.slane %v1688_v0, %v369_v16  ;;  %s1779_s18 = sld [smem:[#allocation4 + $0xe]]  ;;  %s1781_s27 = sld [smem:[#allocation4 + $0x11]] }
  0xa9   : > { %428 = vst [vmem:[#allocation2 + $0x29] sm:$0x1] %v420_v34  ;;  %v583_v43 = vrot.slane %v579_v37, 1  ;;  %v616_v44 = vrot.slane %v612_v38, 2  ;;  %v486_v45 = vadd.f32 %v484_v41, %v458_v20  ;;  %v419_v48 = vrot.slane %v405_v6, %v369_v16  ;;  %s1783_s10 = sld [smem:[#allocation4 + $0xb]]  ;;  %p1994_p6 = scmp.ne.s32.totalorder %s1983_s30, 0 }
  0xaa   : > { %v378_v52 = vcombine.high %v370_v47, %v370_v47  ;;  %v377_v54 = vrot.slane %v1697_v4, %v369_v16  ;;  %v676_v56 = vstv %s1720_s6  ;;  %v709_v57 = vstv %s1722_s11  ;;  %s1789_s6 = sld [smem:[#allocation4 + $0x12]]  ;;  %s1791_s11 = sld [smem:[#allocation4 + $0x17]] }
  0xab   : > { %539 = vrot.lane.b32.xlu1 %v534_v31, %s1400_s1  ;;  %537 = vrot.lane.b32.xlu0 %v533_v28, %s1400_s1  ;;  %v584_v49 = vsel %vm470_vm0, %v582_v39, %v583_v43  ;;  %v617_v50 = vsel %vm504_vm1, %v615_v40, %v616_v44  ;;  %v520_v51 = vadd.f32 %v518_v42, %v486_v45  ;;  %v657_v0 = vstv %s1047_s15  ;;  %s1793_s15 = sld [smem:[#allocation4 + $0x1a]] }
  0xac   : > { %v421_v53 = vcombine.high %v419_v48, %v419_v48  ;;  %386 = vst [vmem:[#allocation2 + $0x20] sm:$0x1] %v378_v52  ;;  %v379_v58 = vcombine.high %v377_v54, %v377_v54  ;;  %v775_v1 = vstv %s1733_s0  ;;  %v808_v2 = vstv %s1735_s12  ;;  %s1816_s0 = sld [smem:[#allocation4 + $0x14]]  ;;  %s1824_s12 = sld [smem:[#allocation4 + $0x1e]] }
  0xad   : > { %v560_v55 = vadd.f32 %v559_v46, %v520_v51  ;;  %v756_v16 = vstv %s1742_s22  ;;  %v461_v33 = vstv %s1761_s28  ;;  %v488_v36 = vstv %s1765_s13  ;;  %s1826_s22 = sld [smem:[#allocation4 + $0x21]]  ;;  %s1831_s28 = sld [smem:[#allocation4 + $0x1b]] }
  0xae   : > { %429 = vst [vmem:[#allocation2 + $0x39] sm:$0x1] %v421_v53  ;;  %387 = vst [vmem:[#allocation2 + $0x30] sm:$0x1] %v379_v58  ;;  %v465_v37 = vstv %s1769_s8  ;;  %v453_v39 = vstv %s1763_s29  ;;  %v522_v41 = vstv %s1767_s9  ;;  %v499_v42 = vstv %s1771_s14  ;;  %s1848_s29 = sld [smem:[#allocation4 + $0x20]]  ;;  %s1860_s13 = sld [smem:[#allocation4 + $0x23]] }
  0xaf   : > { %547 = vrot.lane.b32.xlu1 %v534_v31, %s1399_s3  ;;  %545 = vrot.lane.b32.xlu0 %v533_v28, %s1399_s3  ;;  %v586_v59 = vadd.f32 %v584_v49, %v560_v55  ;;  %v566_v43 = vstv %s1773_s19  ;;  %v599_v44 = vstv %s1775_s17  ;;  %s1867_s9 = sld [smem:[#allocation4 + $0x1d]]  ;;  %s831_s8 = sld [smem:[#allocation3]] }
  0xb0   : > { %v633_v60 = vld [vmem:[#allocation2 + $0x28] sm:$0x3]  ;;  %v554_v45 = vstv %s1777_s7  ;;  %v588_v48 = vstv %s1779_s18  ;;  %v621_v49 = vstv %s1781_s27  ;;  %v562_v52 = vstv %s1783_s10  ;;  %s1022_s14 = sshll.u32 %s1672_s16, 3  ;;  %s1065_s19 = sshll.u32 %s1377_s24, 1 }
  0xb1   : > { %v678_v61 = vmul.f32 %v676_v56, %v633_v60  ;;  %v711_v62 = vmul.f32 %v709_v57, %v633_v60  ;;  %v619_v63 = vadd.f32 %v617_v50, %v586_v59  ;;  %v653_v55 = vstv %s1789_s6  ;;  %s855_s17 = sadd.s32 %s1373_s23, %s1065_s19  ;;  %s353_s18 = scalar_lea.vmem [#allocation12], %s1022_s14 }
  0xb2   : > { %s1066_s7 = sshll.u32 %s855_s17, 7  ;;  %s859_s27 = sshll.u32 %s353_s18, 4  ;;  %s1900_s27 = int_to_ptr.vmem [resolvable:$true] %s859_s27 }
  0xb3   : > { %638 = vrot.lane.b32.xlu1 %v633_v60, %s1400_s1  ;;  %v682_v3 = vrot.slane %v678_v61, 1  ;;  %v715_v4 = vrot.slane %v711_v62, 2  ;;  %v632_v5 = vld [vmem:[#allocation2 + $0x20] sm:$0xff]  ;;  %s844_s6 = scalar_lea.sflag [#allocation6], %s1672_s16  ;;  %s1283_s24 = scalar_lea.vmem %s1900_s27, 128 }
  0xb4   : > { %v658_v7 = vmul.f32 %v657_v0, %v632_v5  ;;  %v677_v8 = vmul.f32 %v676_v56, %v632_v5  ;;  %v710_v9 = vmul.f32 %v709_v57, %v632_v5  ;;  %636 = vrot.lane.b32.xlu0 %v632_v5, %s1400_s1  ;;  %p1284_p13 = scmp.ne.s32.totalorder %s1900_s27, %s1283_s24  ;;  %s1401_s23 = smov [#allocation12]  }
  0xb5   : > { %v732_v6 = vld [vmem:[#allocation2 + $0x38] sm:$0x3]  ;;  %v731_v15 = vld [vmem:[#allocation2 + $0x30] sm:$0xff] }
  0xb6   : > { %v777_v10 = vmul.f32 %v775_v1, %v732_v6  ;;  %v810_v11 = vmul.f32 %v808_v2, %v732_v6  ;;  %v681_v12 = vrot.slane %v677_v8, 1  ;;  %v714_v13 = vrot.slane %v710_v9, 2  ;;  %p1285_p1 = pnand %p1284_p13, %p1994_p6 }
  0xb7   : > { %646 = vrot.lane.b32.xlu1 %v633_v60, %s1399_s3  ;;  %v659_v14 = vadd.f32 %v658_v7, %v619_v63  ;;  %v776_v19 = vmul.f32 %v775_v1, %v731_v15  ;;  %v809_v20 = vmul.f32 %v808_v2, %v731_v15  ;;  %v757_v24 = vmul.f32 %v756_v16, %v731_v15 }
  0xb8   : > { %v781_v17 = vrot.slane %v777_v10, 1  ;;  %v814_v18 = vrot.slane %v810_v11, 2  ;;  %v683_v21 = vsel %vm470_vm0, %v681_v12, %v682_v3  ;;  %v716_v22 = vsel %vm504_vm1, %v714_v13, %v715_v4  ;;  %644 = vrot.lane.b32.xlu0 %v632_v5, %s1399_s3  ;;  %p1286_p0 = pneg %p1285_p1 }
  0xb9   : > { %v685_v23 = vadd.f32 %v683_v21, %v659_v14  ;;  %v780_v25 = vrot.slane %v776_v19, 1  ;;  %v813_v26 = vrot.slane %v809_v20, 2  ;;  %v687_v2 = vstv %s1791_s11  ;;  %s1287_s11 = sshll.u32 %s1401_s23, 4  ;;  %s1288_s11 = int_to_ptr.vmem [resolvable:$false] %s1287_s11 }
  0xba   : > { %v720_v3 = vstv %s1793_s15  ;;  %s1289_s15 = scalar_lea.vmem %s1288_s11, 256  ;;  %p1290_p11 = scmp.lt.s32.totalorder %s1900_s27, %s1288_s11 }
  0xbb   : > { %737 = vrot.lane.b32.xlu1 %v732_v6, %s1400_s1  ;;  %v718_v27 = vadd.f32 %v716_v22, %v685_v23  ;;  %v782_v28 = vsel %vm470_vm0, %v780_v25, %v781_v17  ;;  %v815_v29 = vsel %vm504_vm1, %v813_v26, %v814_v18  ;;  %p1291_p8 = scmp.lt.s32.totalorder %s1289_s15, %s1283_s24 }
  0xbc   : > { %735 = vrot.lane.b32.xlu0 %v731_v15, %s1400_s1  ;;  %s1787_s1 = sld [smem:[#allocation4 + $0x18]] }
  0xbd   : > { %v758_v30 = vadd.f32 %v757_v24, %v718_v27  ;;  %p1292_p2 = por %p1291_p8, %p1290_p11 }
  0xbf   : > { %745 = vrot.lane.b32.xlu1 %v732_v6, %s1399_s3  ;;  %v784_v31 = vadd.f32 %v782_v28, %v758_v30  ;;  %p1293_p3 = pnand %p1292_p2, %p1286_p0 }
  0xc0   : > { %743 = vrot.lane.b32.xlu0 %v731_v15, %s1399_s3  ;;  %s1785_s3 = sld [smem:[#allocation4 + $0x15]] }
  0xc1   : > { %v1759_v32 = vadd.f32 %v815_v29, %v784_v31 }
  0xc2   : > { %v698_v54 = vstv %s1787_s1  ;;  %s1898_s1 = scalar_lea.hbm %s1957_s5, %s1066_s7 }
  0xc6   : > { %v665_v53 = vstv %s1785_s3 }
 0x115   : > { %v444_v34 = vpop.permute.xlu1 %443  ;;  %v435_v35 = vpop.permute.xlu0 %434 }
 0x116   : > { %v450_v38 = vsel %vm449_vm2, %v444_v34, 0.0  ;;  %v441_v40 = vsel %vm440_vm3, 0.0, %v435_v35 }
 0x117   : > { %v489_v46 = vmul.f32 %v488_v36, %v450_v38  ;;  %v466_v47 = vmul.f32 %v465_v37, %v441_v40  ;;  %v523_v56 = vmul.f32 %v522_v41, %v450_v38  ;;  %v500_v58 = vmul.f32 %v499_v42, %v441_v40 }
 0x118   : > { %v462_v10 = vmul.f32 %v461_v33, %v450_v38  ;;  %v454_v11 = vmul.f32 %v453_v39, %v441_v40 }
 0x119   : > { %v446_v50 = vpop.permute.xlu1 %445  ;;  %v437_v51 = vpop.permute.xlu0 %436  ;;  %v493_v0 = vrot.slane %v489_v46, 1  ;;  %v471_v1 = vrot.slane %v466_v47, 1  ;;  %v527_v14 = vrot.slane %v523_v56, 2  ;;  %v505_v16 = vrot.slane %v500_v58, 2 }
 0x11a   : > { %v451_v57 = vsel %vm449_vm2, %v446_v50, 0.0  ;;  %v442_v59 = vsel %vm440_vm3, 0.0, %v437_v51 }
 0x11b   : > { %v490_v60 = vmul.f32 %v488_v36, %v451_v57  ;;  %v524_v61 = vmul.f32 %v522_v41, %v451_v57  ;;  %v467_v62 = vmul.f32 %v465_v37, %v442_v59  ;;  %v501_v63 = vmul.f32 %v499_v42, %v442_v59 }
 0x11d   : > { %v494_v4 = vrot.slane %v490_v60, 1  ;;  %v528_v5 = vrot.slane %v524_v61, 2  ;;  %v472_v6 = vrot.slane %v467_v62, 1  ;;  %v506_v7 = vrot.slane %v501_v63, 2  ;;  %v540_v8 = vpop.permute.xlu1 %539  ;;  %v538_v9 = vpop.permute.xlu0 %537 }
 0x11e   : > { %v544_v12 = vsel %vm440_vm3, 0.0, %v540_v8  ;;  %v543_v13 = vsel %vm440_vm3, 0.0, %v538_v9 }
 0x11f   : > { %v495_v15 = vsel %vm470_vm0, %v493_v0, %v494_v4  ;;  %v473_v17 = vsel %vm470_vm0, %v471_v1, %v472_v6  ;;  %v568_v20 = vmul.f32 %v566_v43, %v544_v12  ;;  %v601_v21 = vmul.f32 %v599_v44, %v544_v12 }
 0x120   : > { %v497_v18 = vadd.f32 %v495_v15, %v462_v10  ;;  %v475_v19 = vadd.f32 %v473_v17, %v454_v11  ;;  %v529_v22 = vsel %vm504_vm1, %v527_v14, %v528_v5  ;;  %v507_v23 = vsel %vm504_vm1, %v505_v16, %v506_v7 }
 0x121   : > { %v567_v24 = vmul.f32 %v566_v43, %v543_v13  ;;  %v600_v25 = vmul.f32 %v599_v44, %v543_v13  ;;  %v548_v26 = vpop.permute.xlu1 %547  ;;  %v546_v27 = vpop.permute.xlu0 %545  ;;  %v572_v28 = vrot.slane %v568_v20, 1  ;;  %v555_v30 = vmul.f32 %v554_v45, %v543_v13 }
 0x122   : > { %v509_v29 = vadd.f32 %v507_v23, %v475_v19  ;;  %v552_v31 = vsel %vm449_vm2, %v548_v26, 0.0  ;;  %v605_v33 = vrot.slane %v601_v21, 2  ;;  %v531_v39 = vadd.f32 %v529_v22, %v497_v18 }
 0x123   : > { %v571_v34 = vrot.slane %v567_v24, 1  ;;  %v604_v35 = vrot.slane %v600_v25, 2  ;;  %v590_v36 = vmul.f32 %v588_v48, %v552_v31  ;;  %v623_v38 = vmul.f32 %v621_v49, %v552_v31 }
 0x124   : > { %v556_v37 = vadd.f32 %v555_v30, %v509_v29  ;;  %v551_v40 = vsel %vm449_vm2, %v546_v27, 0.0  ;;  %v661_v45 = vstv %s1816_s0  ;;  %v764_v1 = vstv %s1824_s12 }
 0x125   : > { %v573_v41 = vsel %vm470_vm0, %v571_v34, %v572_v28  ;;  %v594_v42 = vrot.slane %v590_v36, 1  ;;  %v563_v43 = vmul.f32 %v562_v52, %v551_v40  ;;  %v639_v44 = vpop.permute.xlu1 %638  ;;  %v589_v47 = vmul.f32 %v588_v48, %v551_v40 }
 0x126   : > { %v575_v46 = vadd.f32 %v573_v41, %v556_v37  ;;  %v622_v50 = vmul.f32 %v621_v49, %v551_v40  ;;  %v643_v51 = vsel %vm440_vm3, 0.0, %v639_v44  ;;  %v606_v52 = vsel %vm504_vm1, %v604_v35, %v605_v33  ;;  %v637_v61 = vpop.permute.xlu0 %636 }
 0x127   : > { %v564_v56 = vadd.f32 %v563_v43, %v531_v39  ;;  %v667_v57 = vmul.f32 %v665_v53, %v643_v51  ;;  %v700_v58 = vmul.f32 %v698_v54, %v643_v51  ;;  %v627_v59 = vrot.slane %v623_v38, 2 }
 0x128   : > { %v593_v48 = vrot.slane %v589_v47, 1  ;;  %v626_v60 = vrot.slane %v622_v50, 2  ;;  %v608_v49 = vadd.f32 %v606_v52, %v575_v46  ;;  %v642_v63 = vsel %vm440_vm3, 0.0, %v637_v61 }
 0x129   : > { %v671_v62 = vrot.slane %v667_v57, 1  ;;  %v647_v0 = vpop.permute.xlu1 %646  ;;  %v797_v4 = vstv %s1826_s22  ;;  %v654_v6 = vmul.f32 %v653_v55, %v642_v63  ;;  %v666_v7 = vmul.f32 %v665_v53, %v642_v63 }
 0x12a   : > { %v595_v5 = vsel %vm470_vm0, %v593_v48, %v594_v42  ;;  %v699_v8 = vmul.f32 %v698_v54, %v642_v63  ;;  %v704_v10 = vrot.slane %v700_v58, 2  ;;  %v651_v11 = vsel %vm449_vm2, %v647_v0, 0.0  ;;  %v645_v16 = vpop.permute.xlu0 %644 }
 0x12b   : > { %v597_v9 = vadd.f32 %v595_v5, %v564_v56  ;;  %v752_v12 = vstv %s1831_s28  ;;  %v655_v13 = vadd.f32 %v654_v6, %v608_v49  ;;  %v670_v14 = vrot.slane %v666_v7, 1 }
 0x12c   : > { %v689_v15 = vmul.f32 %v687_v2, %v651_v11  ;;  %v628_v55 = vsel %vm504_vm1, %v626_v60, %v627_v59  ;;  %v703_v53 = vrot.slane %v699_v8, 2  ;;  %v722_v54 = vmul.f32 %v720_v3, %v651_v11 }
 0x12d   : > { %v630_v17 = vadd.f32 %v628_v55, %v597_v9  ;;  %v650_v18 = vsel %vm449_vm2, %v645_v16, 0.0  ;;  %v738_v19 = vpop.permute.xlu1 %737  ;;  %v672_v20 = vsel %vm470_vm0, %v670_v14, %v671_v62  ;;  %v786_v27 = vstv %s1848_s29 }
 0x12e   : > { %v693_v21 = vrot.slane %v689_v15, 1  ;;  %v662_v22 = vmul.f32 %v661_v45, %v650_v18  ;;  %v688_v23 = vmul.f32 %v687_v2, %v650_v18  ;;  %v674_v24 = vadd.f32 %v672_v20, %v655_v13  ;;  %v736_v33 = vpop.permute.xlu0 %735 }
 0x12f   : > { %v721_v25 = vmul.f32 %v720_v3, %v650_v18  ;;  %v742_v26 = vsel %vm440_vm3, 0.0, %v738_v19  ;;  %v726_v34 = vrot.slane %v722_v54, 2  ;;  %v705_v36 = vsel %vm504_vm1, %v703_v53, %v704_v10 }
 0x130   : > { %v663_v28 = vadd.f32 %v662_v22, %v630_v17  ;;  %v692_v29 = vrot.slane %v688_v23, 1  ;;  %v766_v30 = vmul.f32 %v764_v1, %v742_v26  ;;  %v799_v31 = vmul.f32 %v797_v4, %v742_v26 }
 0x131   : > { %v725_v35 = vrot.slane %v721_v25, 2  ;;  %v741_v37 = vsel %vm440_vm3, 0.0, %v736_v33  ;;  %v746_v2 = vpop.permute.xlu1 %745  ;;  %v707_v39 = vadd.f32 %v705_v36, %v674_v24  ;;  %v819_v40 = vstv %s1860_s13 }
 0x132   : > { %v694_v38 = vsel %vm470_vm0, %v692_v29, %v693_v21  ;;  %v770_v3 = vrot.slane %v766_v30, 1  ;;  %v753_v42 = vmul.f32 %v752_v12, %v741_v37  ;;  %v765_v43 = vmul.f32 %v764_v1, %v741_v37  ;;  %v744_v50 = vpop.permute.xlu0 %743 }
 0x133   : > { %v696_v41 = vadd.f32 %v694_v38, %v663_v28  ;;  %v798_v44 = vmul.f32 %v797_v4, %v741_v37  ;;  %v803_v45 = vrot.slane %v799_v31, 2  ;;  %v750_v46 = vsel %vm449_vm2, %v746_v2, 0.0 }
 0x134   : > { %v760_v47 = vstv %s1867_s9  ;;  %v754_v51 = vadd.f32 %v753_v42, %v707_v39  ;;  %v769_v56 = vrot.slane %v765_v43, 1  ;;  %v788_v57 = vmul.f32 %v786_v27, %v750_v46 }
 0x135   : > { %v727_v58 = vsel %vm504_vm1, %v725_v35, %v726_v34  ;;  %v802_v52 = vrot.slane %v798_v44, 2  ;;  %v821_v59 = vmul.f32 %v819_v40, %v750_v46  ;;  %v749_v60 = vsel %vm449_vm2, %v744_v50, 0.0 }
 0x136   : > { %v729_v48 = vadd.f32 %v727_v58, %v696_v41  ;;  %v771_v49 = vsel %vm470_vm0, %v769_v56, %v770_v3  ;;  %v761_v61 = vmul.f32 %v760_v47, %v749_v60  ;;  %v792_v63 = vrot.slane %v788_v57, 1 }
 0x137   : > { %v773_v62 = vadd.f32 %v771_v49, %v754_v51  ;;  %v787_v0 = vmul.f32 %v786_v27, %v749_v60  ;;  %v820_v1 = vmul.f32 %v819_v40, %v749_v60  ;;  %v804_v5 = vsel %vm504_vm1, %v802_v52, %v803_v45 }
 0x138   : > { %v762_v4 = vadd.f32 %v761_v61, %v729_v48  ;;  %v825_v6 = vrot.slane %v821_v59, 2  ;;  %v832_v15 = vstv %s831_s8 }
 0x139   : > { %v791_v7 = vrot.slane %v787_v0, 1  ;;  %v824_v8 = vrot.slane %v820_v1, 2  ;;  %v806_v9 = vadd.f32 %v804_v5, %v773_v62 }
 0x13b   : > { %v793_v10 = vsel %vm470_vm0, %v791_v7, %v792_v63  ;;  %v826_v12 = vsel %vm504_vm1, %v824_v8, %v825_v6  ;;  %v829_v13 = vadd.f32 %v1759_v32, %v806_v9 }
 0x13c   : > { %v795_v11 = vadd.f32 %v793_v10, %v762_v4 }
 0x13e   : > { %v828_v14 = vadd.f32 %v826_v12, %v795_v11 }
 0x140   : > { %v830_v55 = vadd.f32 %v829_v13, %v828_v14 }
 0x142   : > { %v833_v16 = vadd.f32 %v832_v15, %v830_v55 }
 0x144   : > { %v834_v53 = vsub.f32 0.0, %v833_v16 }
 0x146   : > { %v835_v54 = vmul.f32 1.442695, %v834_v53 }
 0x148   : > { %1174 = vpow2.f32 %v835_v54 }
 0x152   : > { %v1175_v17 = vpop.eup %1174 }
 0x153   : > { %v837_v18 = vadd.f32 1.0, %v1175_v17 }
 0x155   : > { %1176 = vrcp.f32 %v837_v18 }
 0x15f   : > { %v1177_v19 = vpop.eup %1176 }
 0x160   : > { %v840_v32 = vmul.f32 9.991667, %v1177_v19 }
 0x162   : > { %v841_v20 = vadd.f32 0.008333334, %v840_v32 }
 0x164   : > { %842 = vst [vmem:[%s353_s18] sm:$0xff] %v841_v20 }
 0x165   : > { %1296 = shalt.err (!%p1293_p3)
}
 0x166   : > { %s1297_s16 = scalar_lea.hbm %s1898_s1, 128  ;;  %s1301_s22 = scalar_lea.hbm %s1957_s5, 512 }
 0x167   : > { %p1298_p4 = scmp.ne.s32.totalorder %s1898_s1, %s1297_s16  ;;  %p1302_p9 = scmp.lt.u32.totalorder %s1898_s1, %s1957_s5 }
 0x168   : > { %p1303_p10 = scmp.lt.u32.totalorder %s1301_s22, %s1297_s16  ;;  %p1305_p13 = scmp.lt.u32.totalorder %s1297_s16, %s1898_s1 }
 0x169   : > { %p1299_p5 = pnand %p1298_p4, %p1994_p6 }
 0x16a   : > { %p1304_p7 = por %p1303_p10, %p1302_p9 }
 0x16b   : > { %p1300_p12 = pneg %p1299_p5 }
 0x16c   : > { %p1306_p1 = por %p1305_p13, %p1304_p7 }
 0x16e   : > { %p1307_p0 = pnand %p1306_p1, %p1300_p12 }
 0x170   : > { %1310 = shalt.err (!%p1307_p0)
}
 0x171   : > { %1079 = dma.vmem_to_hbm [thread:$0]  (%p1994_p6), %s1900_s27, 128, %s1898_s1, %s844_s6  }
 0x172 PF: > { %s1995_s13 = sld [smem:[#allocation22_spill]]  ;;  %p1102_p11 = scmp.ge.s32.totalorder %s1389_s26, 2 }
 0x173   : > { %s871_s9 = sand.u32 1, %s1361_s20  }
 0x174   : > { %s872_s8 = scalar_lea.sflag [#allocation6], %s871_s9 }
 0x178   : > { %p1996_p8 = scmp.ne.s32.totalorder %s1995_s13, 0 }
 0x17a   : > { %p1096_p2 = pnand %p1102_p11, %p1996_p8 }
 0x17c   : > { %1356 = dma.done.wait (!%p1096_p2), %s872_s8, 128  }
 0x17d   : > { %1358 = vsyncadd (!%p1096_p2), %s872_s8, 4294967168  ;;  %s26_s26 = sadd.s32 1, %s1389_s26   ;;  %s1997_s14 = sld [smem:[#allocation17_spill]] }
 0x17e   : > { %p23_p3 = scmp.ge.s32.totalorder %s26_s26, 6   ;;  %s1998_s22 = sld [smem:[#allocation21_spill]] }
 0x17f   : > { %s1999_s24 = sld [smem:[#allocation18_spill]]  ;;  %s2000_s30 = sld [smem:[#allocation19_spill]] }
 0x180   : > { %s2001_s1 = sld [smem:[#allocation20_spill]]  ;;  %s2002_s20 = smov %s1365_s21 }
 0x181   : > { %s2004_s23 = smov %s1381_s25  ;;  %25 = sbr.rel (!%p23_p3) target bundleno = 14 (0xe), region = 117 }
 0x183   : > { %s2003_s21 = smov %s1997_s14 }
 0x185   : > { %s2005_s25 = smov %s2000_s30 }
 0x188   :  { %877 = vsyncpa [#allocation5], 1 }
 0x189   :  { %879 = vsyncpa [#allocation5 + $0x1], 1 }
 0x18a   :  { %880 = vsyncpa [#allocation10], 1 }
 0x18b   :  { %882 = vsyncpa [#allocation10 + $0x1], 1 }
 0x18c   :  { %883 = vsyncpa [#allocation6], 1 }
 0x18d   :  { %885 = vsyncpa [#allocation6 + $0x1], 1 }
 0x18e   :  { %886 = vsyncpa [#allocation7], 1 }
 0x18f   :  { %888 = vsyncpa [#allocation7 + $0x1], 1 }

</bundles_post_ra>
